<compile_context>
chip_gen: v7x
topology: tpu7x:2x2x1
jax: 0.10.0
libtpu: 0.0.40
codegen_flags: <defaults>
</compile_context>

<pallas_src>
import functools
from collections import defaultdict

import numpy as np
import jax
import jax.numpy as jnp
from jax.experimental import pallas as pl
from jax.experimental.pallas import tpu as pltpu


# ----------------------------------------------------------------------------
# Single fused kernel
# ----------------------------------------------------------------------------
def _encoder_kernel(x_ref, wf_ref, bf_ref, w1s_ref, w1r_ref, pe_ref, w2_ref,
                    b2_ref, o_ref, sr_ref, *, batch, time):
    # 1) folded embedder + send/recv layer; neurons live on the lane axis via
    #    the block-diagonal W_fold_big -> row layout per (b,t):
    #    [n0_send(16) n0_recv(16) | n1_send n1_recv | n2_send n2_recv]
    sr = jnp.dot(x_ref[...], wf_ref[...], preferred_element_type=jnp.float32)
    sr = jnp.maximum(sr + bf_ref[...], 0.0)
    sr_ref[...] = sr                                    # stays in VMEM scratch

    # 2) 2-layer combine MLP per batch (unrolled, batch is tiny). The temporal
    #    shift is a static sublane slice of the scratch; edge gather + feature
    #    concat are baked into w1s/w1r; pe_ref carries pe-term + b_c1.
    for bb in range(batch):
        s_next = sr_ref[pl.ds(bb * time + 1, time - 1), :]   # send embeds @ tau+1
        r_prev = sr_ref[pl.ds(bb * time, time - 1), :]       # recv embeds @ tau
        h = jnp.dot(s_next, w1s_ref[...], preferred_element_type=jnp.float32)
        h = h + jnp.dot(r_prev, w1r_ref[...], preferred_element_type=jnp.float32)
        h = jnp.maximum(h + pe_ref[...], 0.0)
        out = jnp.dot(h, w2_ref[...], preferred_element_type=jnp.float32)
        out = out + b2_ref[...]
        o_ref[bb, :, :] = out.astype(o_ref.dtype)            # lane-dense (128)


def encoder_fused(x2d, w_fold, b_fold, w1s, w1r, pe_add, w2, b2, *, batch, time):
    """x2d: (b*t, nu*F) -> (b, t-1, Npad) with edges*outs on the first lanes."""
    M, K = x2d.shape
    L = w_fold.shape[1]          # nu * 2 * node_embed_size
    KB = w1s.shape[1]            # E * feat
    Npad = w2.shape[1]           # lane-dense padded output width (>=128)
    kernel = functools.partial(_encoder_kernel, batch=batch, time=time)
    return pl.pallas_call(
        kernel,
        out_shape=jax.ShapeDtypeStruct((batch, time - 1, Npad), x2d.dtype),
        grid=(1,),
        in_specs=[
            pl.BlockSpec((M, K), lambda i: (0, 0)),
            pl.BlockSpec((K, L), lambda i: (0, 0)),
            pl.BlockSpec((1, L), lambda i: (0, 0)),
            pl.BlockSpec((L, KB), lambda i: (0, 0)),
            pl.BlockSpec((L, KB), lambda i: (0, 0)),
            pl.BlockSpec((time - 1, KB), lambda i: (0, 0)),
            pl.BlockSpec((KB, Npad), lambda i: (0, 0)),
            pl.BlockSpec((1, Npad), lambda i: (0, 0)),
        ],
        out_specs=pl.BlockSpec((batch, time - 1, Npad), lambda i: (0, 0, 0)),
        scratch_shapes=[pltpu.VMEM((M, L), jnp.float32)],
        compiler_params=pltpu.CompilerParams(dimension_semantics=("arbitrary",)),
    )(x2d, w_fold, b_fold.reshape(1, -1), w1s, w1r, pe_add, w2,
      b2.reshape(1, -1))


# ----------------------------------------------------------------------------
# Helpers
# ----------------------------------------------------------------------------
def get_positional_encoding(d, max_len):
    """Standard sinusoidal positional encoding, shape (max_len, d)."""
    position = jnp.arange(max_len, dtype=jnp.float32)[:, None]
    div_term = jnp.exp(
        jnp.arange(0, d, 2, dtype=jnp.float32) * (-jnp.log(10000.0) / d)
    )
    pe = jnp.zeros((max_len, d), dtype=jnp.float32)
    pe = pe.at[:, 0::2].set(jnp.sin(position * div_term))
    pe = pe.at[:, 1::2].set(jnp.cos(position * div_term))
    return pe


def torch_linear_init(key, in_f, out_f):
    """Mimic nn.Linear default init: U(-1/sqrt(in), 1/sqrt(in)), stored (in, out)."""
    kw, kb = jax.random.split(key)
    bound = 1.0 / np.sqrt(in_f)
    w = jax.random.uniform(kw, (in_f, out_f), jnp.float32, -bound, bound)
    b = jax.random.uniform(kb, (out_f,), jnp.float32, -bound, bound)
    return w, b


# ----------------------------------------------------------------------------
# Encoder (synthetic config: deterministic params, no checkpoint loading)
# ----------------------------------------------------------------------------
class PallasEncoder:
    def __init__(self, key):
        # ---- synthetic hyper-params consistent with the module __init__ ----
        self.neuron_ids = [0, 1, 2, 3]                 # num_vars = 4
        self.spike_feat = 4                            # last dim of spikes
        self.inp_size = 32                             # embedder embedding_size
        self.node_embed_size = 16
        self.positional_encoding_size = 8
        self.num_edge_types = 2                        # out_size = 3
        self.send_recv_num_layers = 1
        self.num_combine_layers = 2
        self.max_time = 32                             # data.max_time (synthetic)
        init_gain = 0.1

        # ---- edge bookkeeping (mirrors __init__; edge list built in-script) ----
        edges_raw = np.array(
            [[0, 1], [1, 0], [0, 2], [2, 0], [1, 2], [2, 1], [3, 3]]
        )  # includes one self-edge to exercise the no_self filter
        edges = np.array([[s, r] for s, r in edges_raw if s != r])
        self.edges = edges
        orig_send = list(edges[:, 0])
        orig_recv = list(edges[:, 1])
        used_neurons = sorted(list(np.unique(edges)))
        neuron_id_dict = {int(nid): i for i, nid in enumerate(self.neuron_ids)}
        self.used_neuron_idxs = np.array(
            [neuron_id_dict[nid] for nid in used_neurons]
        )
        val_dict = {v: i for i, v in enumerate(used_neurons)}
        self.send_edges = np.array([val_dict[s] for s in orig_send])
        self.recv_edges = np.array([val_dict[r] for r in orig_recv])

        self.feat_size = (
            2 * self.node_embed_size + 2 * self.positional_encoding_size
        )
        self.out_size = self.num_edge_types + 1

        ne = self.node_embed_size
        pos = self.positional_encoding_size
        feat = self.feat_size
        outs = self.out_size
        E = len(self.send_edges)
        nu = len(self.used_neuron_idxs)
        F = self.spike_feat
        self.E = E

        # ---- deterministic parameter init (matches nn.Linear defaults) ----
        keys = jax.random.split(key, 5)
        # embedder: Linear(spike_feat -> inp_size), no activation
        self.W_emb, self.b_emb = torch_linear_init(keys[0], F, self.inp_size)
        # send_fc_out / recv_fc_out: Linear(inp_size -> node_embed_size) + ReLU
        self.W_send, self.b_send = torch_linear_init(keys[1], self.inp_size, ne)
        self.W_recv, self.b_recv = torch_linear_init(keys[2], self.inp_size, ne)
        # combine: Linear(feat, feat)+ReLU, Linear(feat, out_size)
        self.W_c1, self.b_c1 = torch_linear_init(keys[3], feat, feat)
        self.W_c2, _ = torch_linear_init(keys[4], feat, outs)
        self.W_c2 = self.W_c2 * init_gain                 # final_layer.weight *= gain
        self.b_c2 = jnp.zeros((outs,), jnp.float32)       # bias.fill_(0.0)

        # ---- fold embedder into send/recv layer (exact: no activation between) ----
        W_sr = np.concatenate(
            [np.asarray(self.W_send), np.asarray(self.W_recv)], axis=1)   # (32, 32)
        b_sr = np.concatenate(
            [np.asarray(self.b_send), np.asarray(self.b_recv)])           # (32,)
        W_fold = np.asarray(self.W_emb) @ W_sr                            # (F, 2*ne)
        b_fold = np.asarray(self.b_emb) @ W_sr + b_sr                     # (2*ne,)

        # ---- block-diagonal expansion: neurons on the lane axis ----
        L = nu * 2 * ne                                                   # 96
        W_fold_big = np.zeros((nu * F, L), np.float32)
        for u in range(nu):
            W_fold_big[u * F:(u + 1) * F, u * 2 * ne:(u + 1) * 2 * ne] = W_fold
        self.W_fold_big = jnp.asarray(W_fold_big)
        self.b_fold_big = jnp.asarray(np.tile(b_fold, nu))                # (L,)

        # ---- layer-1 combine weights with edge gather + feature concat baked in ----
        # W_c1 input-row layout: [send 0:16 | pe_next 16:24 | recv 24:40 | pe_prev 40:48]
        W_c1_np = np.asarray(self.W_c1)
        W_c2_np = np.asarray(self.W_c2)
        W1s_full = np.zeros((L, E * feat), np.float32)
        W1r_full = np.zeros((L, E * feat), np.float32)
        for ei in range(E):
            sn = int(self.send_edges[ei])
            rn = int(self.recv_edges[ei])
            W1s_full[sn * 2 * ne: sn * 2 * ne + ne,
                     ei * feat:(ei + 1) * feat] = W_c1_np[:ne]
            W1r_full[rn * 2 * ne + ne: (rn + 1) * 2 * ne,
                     ei * feat:(ei + 1) * feat] = W_c1_np[ne + pos: 2 * ne + pos]
        self.W1s_full = jnp.asarray(W1s_full)
        self.W1r_full = jnp.asarray(W1r_full)

        # ---- layer-2 weights: block-diagonal, padded to 128 lanes (lane-dense store) ----
        n_out = E * outs                                                  # 18
        self.n_out_pad = max(128, ((n_out + 127) // 128) * 128)
        W2_pad = np.zeros((E * feat, self.n_out_pad), np.float32)
        for ei in range(E):
            W2_pad[ei * feat:(ei + 1) * feat, ei * outs:(ei + 1) * outs] = W_c2_np
        b2_pad = np.zeros((self.n_out_pad,), np.float32)
        b2_pad[:n_out] = np.tile(np.asarray(self.b_c2), E)
        self.W2_pad = jnp.asarray(W2_pad)
        self.b2_pad = jnp.asarray(b2_pad)

        # ---- positional-encoding + first-layer-bias term, precomputed once ----
        # pe_term[tau] = pe[tau+1] @ W_c1[16:24] + pe[tau] @ W_c1[40:48] + b_c1
        pe_full = np.asarray(get_positional_encoding(pos, self.max_time))
        b_c1_np = np.asarray(self.b_c1)
        pe_term = (pe_full[1:] @ W_c1_np[ne:ne + pos]
                   + pe_full[:-1] @ W_c1_np[2 * ne + pos:]
                   + b_c1_np)                                             # (max_time-1, feat)
        self.pe_add_full = jnp.asarray(np.tile(pe_term, (1, E)))          # (max_time-1, E*feat)

        self._forward_jit = jax.jit(self._forward_array)

    # ------------------------------------------------------------------
    def _forward_array(self, spikes):
        b, t, _, f = spikes.shape
        assert t <= self.max_time
        x = spikes[:, :, self.used_neuron_idxs]            # (b, t, nu, F)
        nu = x.shape[2]
        x2d = x.reshape(b * t, nu * f)                     # neurons -> lanes
        pe_add = self.pe_add_full[: t - 1]                 # (t-1, E*feat), precomputed

        res = encoder_fused(
            x2d, self.W_fold_big, self.b_fold_big,
            self.W1s_full, self.W1r_full, pe_add,
            self.W2_pad, self.b2_pad, batch=b, time=t)     # (b, t-1, 128)

        n_out = self.E * self.out_size
        return res[..., :n_out].reshape(b, t - 1, self.E, self.out_size)

    def forward(self, spikes):
        result = self._forward_jit(spikes)                 # (b, t-1, E, outs)
        # per-edge dict built OUTSIDE jit: final_result[recv][send] = result[:, :, idx]
        final_result = defaultdict(dict)
        for idx, (s_, r_) in enumerate(self.edges):
            final_result[int(r_)][int(s_)] = result[:, :, idx]
        return {"dynamic_edge_weights": dict(final_result)}


# ----------------------------------------------------------------------------
# Pure-JAX reference of the original PyTorch forward (for correctness check)
# ----------------------------------------------------------------------------
def reference_forward(enc, spikes):
    b, t, _, _ = spikes.shape
    x = spikes[:, :, enc.used_neuron_idxs]
    emb = x @ enc.W_emb + enc.b_emb
    send = jax.nn.relu(emb @ enc.W_send + enc.b_send)
    recv = jax.nn.relu(emb @ enc.W_recv + enc.b_recv)
    send_e = send[:, :, enc.send_edges]
    recv_e = recv[:, :, enc.recv_edges]
    E = send_e.shape[2]
    pos = enc.positional_encoding_size
    pe = get_positional_encoding(pos, t)
    pe_b = jnp.broadcast_to(pe[None, :, None, :], (b, t, E, pos))
    send_e = jnp.concatenate([send_e, pe_b], axis=-1)
    recv_e = jnp.concatenate([recv_e, pe_b], axis=-1)
    full = jnp.concatenate([send_e[:, 1:], recv_e[:, :-1]], axis=-1)
    h = jax.nn.relu(full @ enc.W_c1 + enc.b_c1)
    return h @ enc.W_c2 + enc.b_c2                        # (b, t-1, E, outs)


# ----------------------------------------------------------------------------
if __name__ == "__main__":
    key = jax.random.PRNGKey(0)
    k_param, k_data = jax.random.split(key)

    enc = PallasEncoder(k_param)

    # spikes: (batch=2, time=8, num_vars=4, spike_feat=4)
    spikes = jax.random.normal(k_data, (2, 8, 4, 4), dtype=jnp.float32)

    # run fused kernel (jitted) once and block
    result = jax.block_until_ready(enc._forward_jit(spikes))   # (2, 7, 6, 3)

    # correctness: compare against plain-JAX reference of the PyTorch forward
    ref = reference_forward(enc, spikes)                       # (2, 7, 6, 3)
    assert result.shape == ref.shape, (result.shape, ref.shape)
    assert bool(jnp.all(jnp.isfinite(result)))
    assert bool(jnp.allclose(result, ref, rtol=2e-3, atol=2e-3)), (
        float(jnp.max(jnp.abs(result - ref)))
    )

    # module-level output semantics (dict built outside jit)
    out = enc.forward(spikes)
    for idx, (s, r) in enumerate(enc.edges):
        got = out["dynamic_edge_weights"][int(r)][int(s)]
        assert got.shape == (2, 7, 3), got.shape
        assert bool(jnp.allclose(got, ref[:, :, idx], rtol=2e-3, atol=2e-3))

    print("KERNEL_OK")
</pallas_src>

<mosaic_0001>
module attributes {stable_mosaic.version = 11 : i64} {
  func.func @_encoder_kernel(%arg0: i32, %arg1: memref<16x12xf32, #tpu.memory_space<vmem>>, %arg2: memref<12x96xf32, #tpu.memory_space<vmem>>, %arg3: memref<1x96xf32, #tpu.memory_space<vmem>>, %arg4: memref<96x288xf32, #tpu.memory_space<vmem>>, %arg5: memref<96x288xf32, #tpu.memory_space<vmem>>, %arg6: memref<7x288xf32, #tpu.memory_space<vmem>>, %arg7: memref<288x128xf32, #tpu.memory_space<vmem>>, %arg8: memref<1x128xf32, #tpu.memory_space<vmem>>, %arg9: memref<2x7x128xf32, #tpu.memory_space<vmem>>, %arg10: memref<16x96xf32, #tpu.memory_space<vmem>>) attributes {dimension_semantics = [#tpu.dimension_semantics<arbitrary>], iteration_bounds = array<i64: 1>, scalar_prefetch = 0 : i64, scratch_operands = 1 : i64, tpu.core_type = #tpu.core_type<tc>, window_params = [{pipeline_mode = #tpu.pipeline_mode<synchronous>, transform_indices = @transform_0, window_bounds = array<i64: 16, 12>}, {pipeline_mode = #tpu.pipeline_mode<synchronous>, transform_indices = @transform_1, window_bounds = array<i64: 12, 96>}, {pipeline_mode = #tpu.pipeline_mode<synchronous>, transform_indices = @transform_2, window_bounds = array<i64: 1, 96>}, {pipeline_mode = #tpu.pipeline_mode<synchronous>, transform_indices = @transform_3, window_bounds = array<i64: 96, 288>}, {pipeline_mode = #tpu.pipeline_mode<synchronous>, transform_indices = @transform_4, window_bounds = array<i64: 96, 288>}, {pipeline_mode = #tpu.pipeline_mode<synchronous>, transform_indices = @transform_5, window_bounds = array<i64: 7, 288>}, {pipeline_mode = #tpu.pipeline_mode<synchronous>, transform_indices = @transform_6, window_bounds = array<i64: 288, 128>}, {pipeline_mode = #tpu.pipeline_mode<synchronous>, transform_indices = @transform_7, window_bounds = array<i64: 1, 128>}, {pipeline_mode = #tpu.pipeline_mode<synchronous>, transform_indices = @transform_8, window_bounds = array<i64: 2, 7, 128>}]} {
    %c0 = arith.constant 0 : index
    %c0_0 = arith.constant 0 : index
    %0 = vector.load %arg1[%c0, %c0_0] : memref<16x12xf32, #tpu.memory_space<vmem>>, vector<16x12xf32>
    %c0_1 = arith.constant 0 : index
    %c0_2 = arith.constant 0 : index
    %1 = vector.load %arg2[%c0_1, %c0_2] : memref<12x96xf32, #tpu.memory_space<vmem>>, vector<12x96xf32>
    %cst = arith.constant dense<0.000000e+00> : vector<16x96xf32>
    %2 = tpu.matmul %0, %1, %cst {dimension_numbers = #tpu.dot_dimension_numbers<[1], [0], [0], [1], [0, 0, 1, 1], [], []>} : vector<16x12xf32>, vector<12x96xf32>, vector<16x96xf32> -> vector<16x96xf32>
    %c0_3 = arith.constant 0 : index
    %c0_4 = arith.constant 0 : index
    %3 = vector.load %arg3[%c0_3, %c0_4] : memref<1x96xf32, #tpu.memory_space<vmem>>, vector<1x96xf32>
    %4 = vector.broadcast %3 : vector<1x96xf32> to vector<16x96xf32>
    %5 = arith.addf %2, %4 : vector<16x96xf32>
    %cst_5 = arith.constant 0.000000e+00 : f32
    %6 = vector.broadcast %cst_5 : f32 to vector<16x96xf32>
    %7 = arith.maximumf %5, %6 : vector<16x96xf32>
    %c0_6 = arith.constant 0 : index
    %c0_7 = arith.constant 0 : index
    %8 = vector.load %arg10[%c0_6, %c0_7] : memref<16x96xf32, #tpu.memory_space<vmem>>, vector<16x96xf32>
    tpu.vector_store %arg10[%c0_6, %c0_7], %7 {strides = array<i32>} : memref<16x96xf32, #tpu.memory_space<vmem>>, vector<16x96xf32>,
    %c1 = arith.constant 1 : index
    %c0_8 = arith.constant 0 : index
    %9 = vector.load %arg10[%c1, %c0_8] : memref<16x96xf32, #tpu.memory_space<vmem>>, vector<7x96xf32>
    %c0_9 = arith.constant 0 : index
    %c0_10 = arith.constant 0 : index
    %10 = vector.load %arg10[%c0_9, %c0_10] : memref<16x96xf32, #tpu.memory_space<vmem>>, vector<7x96xf32>
    %c0_11 = arith.constant 0 : index
    %c0_12 = arith.constant 0 : index
    %11 = vector.load %arg4[%c0_11, %c0_12] : memref<96x288xf32, #tpu.memory_space<vmem>>, vector<96x288xf32>
    %cst_13 = arith.constant dense<0.000000e+00> : vector<7x288xf32>
    %12 = tpu.matmul %9, %11, %cst_13 {dimension_numbers = #tpu.dot_dimension_numbers<[1], [0], [0], [1], [0, 0, 1, 1], [], []>} : vector<7x96xf32>, vector<96x288xf32>, vector<7x288xf32> -> vector<7x288xf32>
    %c0_14 = arith.constant 0 : index
    %c0_15 = arith.constant 0 : index
    %13 = vector.load %arg5[%c0_14, %c0_15] : memref<96x288xf32, #tpu.memory_space<vmem>>, vector<96x288xf32>
    %cst_16 = arith.constant dense<0.000000e+00> : vector<7x288xf32>
    %14 = tpu.matmul %10, %13, %cst_16 {dimension_numbers = #tpu.dot_dimension_numbers<[1], [0], [0], [1], [0, 0, 1, 1], [], []>} : vector<7x96xf32>, vector<96x288xf32>, vector<7x288xf32> -> vector<7x288xf32>
    %15 = arith.addf %12, %14 : vector<7x288xf32>
    %c0_17 = arith.constant 0 : index
    %c0_18 = arith.constant 0 : index
    %16 = vector.load %arg6[%c0_17, %c0_18] : memref<7x288xf32, #tpu.memory_space<vmem>>, vector<7x288xf32>
    %17 = arith.addf %15, %16 : vector<7x288xf32>
    %cst_19 = arith.constant 0.000000e+00 : f32
    %18 = vector.broadcast %cst_19 : f32 to vector<7x288xf32>
    %19 = arith.maximumf %17, %18 : vector<7x288xf32>
    %c0_20 = arith.constant 0 : index
    %c0_21 = arith.constant 0 : index
    %20 = vector.load %arg7[%c0_20, %c0_21] : memref<288x128xf32, #tpu.memory_space<vmem>>, vector<288x128xf32>
    %cst_22 = arith.constant dense<0.000000e+00> : vector<7x128xf32>
    %21 = tpu.matmul %19, %20, %cst_22 {dimension_numbers = #tpu.dot_dimension_numbers<[1], [0], [0], [1], [0, 0, 1, 1], [], []>} : vector<7x288xf32>, vector<288x128xf32>, vector<7x128xf32> -> vector<7x128xf32>
    %c0_23 = arith.constant 0 : index
    %c0_24 = arith.constant 0 : index
    %22 = vector.load %arg8[%c0_23, %c0_24] : memref<1x128xf32, #tpu.memory_space<vmem>>, vector<1x128xf32>
    %23 = vector.broadcast %22 : vector<1x128xf32> to vector<7x128xf32>
    %24 = arith.addf %21, %23 : vector<7x128xf32>
    %c0_25 = arith.constant 0 : index
    %c0_26 = arith.constant 0 : index
    %c0_27 = arith.constant 0 : index
    %25 = vector.load %arg9[%c0_25, %c0_26, %c0_27] : memref<2x7x128xf32, #tpu.memory_space<vmem>>, vector<1x7x128xf32>
    %26 = vector.shape_cast %25 : vector<1x7x128xf32> to vector<7x128xf32>
    %27 = vector.shape_cast %24 : vector<7x128xf32> to vector<1x7x128xf32>
    tpu.vector_store %arg9[%c0_25, %c0_26, %c0_27], %27 {strides = array<i32>} : memref<2x7x128xf32, #tpu.memory_space<vmem>>, vector<1x7x128xf32>,
    %c9 = arith.constant 9 : index
    %c0_28 = arith.constant 0 : index
    %28 = vector.load %arg10[%c9, %c0_28] : memref<16x96xf32, #tpu.memory_space<vmem>>, vector<7x96xf32>
    %c8 = arith.constant 8 : index
    %c0_29 = arith.constant 0 : index
    %29 = vector.load %arg10[%c8, %c0_29] : memref<16x96xf32, #tpu.memory_space<vmem>>, vector<7x96xf32>
    %c0_30 = arith.constant 0 : index
    %c0_31 = arith.constant 0 : index
    %30 = vector.load %arg4[%c0_30, %c0_31] : memref<96x288xf32, #tpu.memory_space<vmem>>, vector<96x288xf32>
    %cst_32 = arith.constant dense<0.000000e+00> : vector<7x288xf32>
    %31 = tpu.matmul %28, %30, %cst_32 {dimension_numbers = #tpu.dot_dimension_numbers<[1], [0], [0], [1], [0, 0, 1, 1], [], []>} : vector<7x96xf32>, vector<96x288xf32>, vector<7x288xf32> -> vector<7x288xf32>
    %c0_33 = arith.constant 0 : index
    %c0_34 = arith.constant 0 : index
    %32 = vector.load %arg5[%c0_33, %c0_34] : memref<96x288xf32, #tpu.memory_space<vmem>>, vector<96x288xf32>
    %cst_35 = arith.constant dense<0.000000e+00> : vector<7x288xf32>
    %33 = tpu.matmul %29, %32, %cst_35 {dimension_numbers = #tpu.dot_dimension_numbers<[1], [0], [0], [1], [0, 0, 1, 1], [], []>} : vector<7x96xf32>, vector<96x288xf32>, vector<7x288xf32> -> vector<7x288xf32>
    %34 = arith.addf %31, %33 : vector<7x288xf32>
    %c0_36 = arith.constant 0 : index
    %c0_37 = arith.constant 0 : index
    %35 = vector.load %arg6[%c0_36, %c0_37] : memref<7x288xf32, #tpu.memory_space<vmem>>, vector<7x288xf32>
    %36 = arith.addf %34, %35 : vector<7x288xf32>
    %cst_38 = arith.constant 0.000000e+00 : f32
    %37 = vector.broadcast %cst_38 : f32 to vector<7x288xf32>
    %38 = arith.maximumf %36, %37 : vector<7x288xf32>
    %c0_39 = arith.constant 0 : index
    %c0_40 = arith.constant 0 : index
    %39 = vector.load %arg7[%c0_39, %c0_40] : memref<288x128xf32, #tpu.memory_space<vmem>>, vector<288x128xf32>
    %cst_41 = arith.constant dense<0.000000e+00> : vector<7x128xf32>
    %40 = tpu.matmul %38, %39, %cst_41 {dimension_numbers = #tpu.dot_dimension_numbers<[1], [0], [0], [1], [0, 0, 1, 1], [], []>} : vector<7x288xf32>, vector<288x128xf32>, vector<7x128xf32> -> vector<7x128xf32>
    %c0_42 = arith.constant 0 : index
    %c0_43 = arith.constant 0 : index
    %41 = vector.load %arg8[%c0_42, %c0_43] : memref<1x128xf32, #tpu.memory_space<vmem>>, vector<1x128xf32>
    %42 = vector.broadcast %41 : vector<1x128xf32> to vector<7x128xf32>
    %43 = arith.addf %40, %42 : vector<7x128xf32>
    %c1_44 = arith.constant 1 : index
    %c0_45 = arith.constant 0 : index
    %c0_46 = arith.constant 0 : index
    %44 = vector.load %arg9[%c1_44, %c0_45, %c0_46] : memref<2x7x128xf32, #tpu.memory_space<vmem>>, vector<1x7x128xf32>
    %45 = vector.shape_cast %44 : vector<1x7x128xf32> to vector<7x128xf32>
    %46 = vector.shape_cast %43 : vector<7x128xf32> to vector<1x7x128xf32>
    tpu.vector_store %arg9[%c1_44, %c0_45, %c0_46], %46 {strides = array<i32>} : memref<2x7x128xf32, #tpu.memory_space<vmem>>, vector<1x7x128xf32>,
    return
  }
  func.func @transform_0(%arg0: i32) -> (i32, i32) {
    %c0_i32 = arith.constant 0 : i32
    %c0_i32_0 = arith.constant 0 : i32
    %c0_i32_1 = arith.constant 0 : i32
    return %c0_i32, %c0_i32_0 : i32, i32
  }
  func.func @transform_1(%arg0: i32) -> (i32, i32) {
    %c0_i32 = arith.constant 0 : i32
    %c0_i32_0 = arith.constant 0 : i32
    %c0_i32_1 = arith.constant 0 : i32
    return %c0_i32, %c0_i32_0 : i32, i32
  }
  func.func @transform_2(%arg0: i32) -> (i32, i32) {
    %c0_i32 = arith.constant 0 : i32
    %c0_i32_0 = arith.constant 0 : i32
    %c0_i32_1 = arith.constant 0 : i32
    return %c0_i32, %c0_i32_0 : i32, i32
  }
  func.func @transform_3(%arg0: i32) -> (i32, i32) {
    %c0_i32 = arith.constant 0 : i32
    %c0_i32_0 = arith.constant 0 : i32
    %c0_i32_1 = arith.constant 0 : i32
    return %c0_i32, %c0_i32_0 : i32, i32
  }
  func.func @transform_4(%arg0: i32) -> (i32, i32) {
    %c0_i32 = arith.constant 0 : i32
    %c0_i32_0 = arith.constant 0 : i32
    %c0_i32_1 = arith.constant 0 : i32
    return %c0_i32, %c0_i32_0 : i32, i32
  }
  func.func @transform_5(%arg0: i32) -> (i32, i32) {
    %c0_i32 = arith.constant 0 : i32
    %c0_i32_0 = arith.constant 0 : i32
    %c0_i32_1 = arith.constant 0 : i32
    return %c0_i32, %c0_i32_0 : i32, i32
  }
  func.func @transform_6(%arg0: i32) -> (i32, i32) {
    %c0_i32 = arith.constant 0 : i32
    %c0_i32_0 = arith.constant 0 : i32
    %c0_i32_1 = arith.constant 0 : i32
    return %c0_i32, %c0_i32_0 : i32, i32
  }
  func.func @transform_7(%arg0: i32) -> (i32, i32) {
    %c0_i32 = arith.constant 0 : i32
    %c0_i32_0 = arith.constant 0 : i32
    %c0_i32_1 = arith.constant 0 : i32
    return %c0_i32, %c0_i32_0 : i32, i32
  }
  func.func @transform_8(%arg0: i32) -> (i32, i32, i32) {
    %c0_i32 = arith.constant 0 : i32
    %c0_i32_0 = arith.constant 0 : i32
    %c0_i32_1 = arith.constant 0 : i32
    %c0_i32_2 = arith.constant 0 : i32
    return %c0_i32, %c0_i32_0, %c0_i32_1 : i32, i32, i32
  }
}

</mosaic_0001>

<bundles_post_ra>
// kernel: _forward_array.1
= control target key start
LH: loop header
LB: loop body
LE: loop exit
PB: predicated region body
PF: predicated region fallthrough
CT: control target
= control target key end

     0   :  { %13 = vsyncpa [#allocation4], 0  ;;  %s2478_s0 = inlined_call_operand.vmem [shape: f32[16,12], index: 0, kind: input, shape index: {}]   ;;  %s2479_s1 = inlined_call_operand.hbm [shape: f32[12,96], index: 1, kind: input, shape index: {}]   ;;  %s2480_s2 = inlined_call_operand.vmem [shape: f32[1,96], index: 2, kind: input, shape index: {}]   ;;  %s2481_s3 = inlined_call_operand.hbm [shape: f32[96,288], index: 3, kind: input, shape index: {}]   ;;  %s2482_s4 = inlined_call_operand.hbm [shape: f32[96,288], index: 4, kind: input, shape index: {}]   ;;  %s2483_s5 = inlined_call_operand.hbm [shape: f32[7,288], index: 5, kind: input, shape index: {}]   ;;  %s2484_s6 = inlined_call_operand.vmem [shape: f32[288,128], index: 6, kind: input, shape index: {}]   ;;  %s2485_s7 = inlined_call_operand.vmem [shape: f32[1,128], index: 7, kind: input, shape index: {}]   ;;  %s2486_s8 = inlined_call_operand.vmem [shape: f32[2,7,128], index: 8, kind: output, shape index: {}]  }
   0x1   :  { %14 = vsyncpa [#allocation6], 0 }
   0x2   :  { %15 = vsyncpa [#allocation9], 0  ;;  %s1959_s27 = smov [#allocation5]   ;;  %s1865_s9 = scalar_lea.hbm %s2481_s3, 4608 }
   0x3   :  { %s37_s28 = sshll.u32 %s1959_s27, 4  ;;  %p1866_p0 = scmp.ne.s32.totalorder %s2481_s3, %s1865_s9  ;;  %s38_s28 = int_to_ptr.vmem [resolvable:$true] %s37_s28 }
   0x4   :  { %p1869_p1 = scmp.lt.u32.totalorder %s1865_s9, %s2481_s3 }
   0x6   :  { %p1871_p2 = pnand %p1869_p1, %p1866_p0 }
   0x8   :  { %1874 = shalt.err (!%p1871_p2)
}
   0x9   :  { %s1875_s14 = scalar_lea.vmem %s38_s28, 4608  ;;  %p1880_p4 = scmp.lt.s32.totalorder %s38_s28, %s38_s28 }
   0xa   :  { %p1876_p3 = scmp.ne.s32.totalorder %s38_s28, %s1875_s14  ;;  %p1881_p5 = scmp.lt.s32.totalorder %s1875_s14, %s1875_s14 }
   0xc   :  { %p1882_p6 = por %p1881_p5, %p1880_p4 }
   0xe   :  { %p1883_p7 = pnand %p1882_p6, %p1876_p3 }
  0x10   :  { %1886 = shalt.err (!%p1883_p7)
}
  0x11   :  { %s1960_s15 = smov 384   ;;  %s1961_s16 = smov 24  }
  0x12   :  { %43 = dma.hbm_to_vmem [thread:$0]  %s2481_s3, 4608, %s38_s28, [#allocation6], %s1960_s15, %s1960_s15, %s1961_s16  }
  0x13   :  { %s1962_s19 = smov [#allocation3]   ;;  %s1887_s23 = scalar_lea.hbm %s2479_s1, 256 }
  0x14   :  { %s23_s20 = sshll.u32 %s1962_s19, 4  ;;  %p1888_p8 = scmp.ne.s32.totalorder %s2479_s1, %s1887_s23  ;;  %s24_s20 = int_to_ptr.vmem [resolvable:$true] %s23_s20 }
  0x15   :  { %p1891_p9 = scmp.lt.u32.totalorder %s1887_s23, %s2479_s1 }
  0x17   :  { %p1893_p10 = pnand %p1891_p9, %p1888_p8 }
  0x19   :  { %1896 = shalt.err (!%p1893_p10)
}
  0x1a   :  { %s1897_s29 = scalar_lea.vmem %s24_s20, 256  ;;  %p1902_p12 = scmp.lt.s32.totalorder %s24_s20, %s24_s20 }
  0x1b   :  { %p1898_p11 = scmp.ne.s32.totalorder %s24_s20, %s1897_s29  ;;  %p1903_p13 = scmp.lt.s32.totalorder %s1897_s29, %s1897_s29 }
  0x1d   :  { %p1904_p0 = por %p1903_p13, %p1902_p12 }
  0x1f   :  { %p1905_p1 = pnand %p1904_p0, %p1898_p11 }
  0x21   :  { %1908 = shalt.err (!%p1905_p1)
}
  0x22   :  { %s1963_s3 = smov 128   ;;  %s1964_s28 = smov 8  }
  0x23   :  { %29 = dma.hbm_to_vmem [thread:$0]  %s2479_s1, 256, %s24_s20, [#allocation4], %s1963_s3, %s1963_s3, %s1964_s28  }
  0x24   :  { %s1965_s10 = smov [#allocation7]   ;;  %s1966_s12 = smov [#allocation8]  }
  0x25   :  { %s49_s11 = sshll.u32 %s1965_s10, 4  ;;  %s62_s13 = sshll.u32 %s1966_s12, 4  ;;  %s50_s11 = int_to_ptr.vmem [resolvable:$true] %s49_s11  ;;  %s63_s13 = int_to_ptr.vmem [resolvable:$true] %s62_s13 }
  0x26   :  { %s1909_s18 = scalar_lea.hbm %s2482_s4, 4608 }
  0x27   :  { %p1910_p2 = scmp.ne.s32.totalorder %s2482_s4, %s1909_s18  ;;  %p1913_p3 = scmp.lt.u32.totalorder %s1909_s18, %s2482_s4 }
  0x29   :  { %p1915_p4 = pnand %p1913_p3, %p1910_p2 }
  0x2b   :  { %1918 = shalt.err (!%p1915_p4)
}
  0x2c   :  { %s1919_s1 = scalar_lea.vmem %s50_s11, 4608  ;;  %p1924_p6 = scmp.lt.s32.totalorder %s50_s11, %s50_s11 }
  0x2d   :  { %p1920_p5 = scmp.ne.s32.totalorder %s50_s11, %s1919_s1  ;;  %p1925_p7 = scmp.lt.s32.totalorder %s1919_s1, %s1919_s1 }
  0x2f   :  { %p1926_p8 = por %p1925_p7, %p1924_p6 }
  0x31   :  { %p1927_p9 = pnand %p1926_p8, %p1920_p5 }
  0x33   :  { %1930 = shalt.err (!%p1927_p9)
}
  0x34   :  { %55 = dma.hbm_to_vmem [thread:$0]  %s2482_s4, 4608, %s50_s11, [#allocation6], %s1960_s15, %s1960_s15, %s1961_s16  }
  0x35   :  { %s1931_s27 = scalar_lea.hbm %s2483_s5, 384 }
  0x36   :  { %p1932_p10 = scmp.ne.s32.totalorder %s2483_s5, %s1931_s27  ;;  %p1935_p11 = scmp.lt.u32.totalorder %s1931_s27, %s2483_s5 }
  0x38   :  { %p1937_p12 = pnand %p1935_p11, %p1932_p10 }
  0x3a   :  { %1940 = shalt.err (!%p1937_p12)
}
  0x3b   :  { %s1941_s9 = scalar_lea.vmem %s63_s13, 384  ;;  %p1946_p0 = scmp.lt.s32.totalorder %s63_s13, %s63_s13 }
  0x3c   :  { %p1942_p13 = scmp.ne.s32.totalorder %s63_s13, %s1941_s9  ;;  %p1947_p1 = scmp.lt.s32.totalorder %s1941_s9, %s1941_s9 }
  0x3e   :  { %p1948_p2 = por %p1947_p1, %p1946_p0 }
  0x40   :  { %p1949_p3 = pnand %p1948_p2, %p1942_p13 }
  0x42   :  { %1952 = shalt.err (!%p1949_p3)
}
  0x43   :  { %65 = dma.hbm_to_vmem [thread:$0]  %s2483_s5, 384, %s63_s13, [#allocation9]  }
  0x44   :  { %1953 = dma.done.wait [#allocation4], 256  }
  0x45   :  { %1954 = vsyncadd [#allocation4], 4294967040 }
  0x46   :  { %1955 = dma.done.wait [#allocation6], 9216  }
  0x47   :  { %1956 = vsyncadd [#allocation6], 4294958080 }
  0x48   :  { %1957 = dma.done.wait [#allocation9], 384  }
  0x49   :  { %1958 = vsyncadd [#allocation9], 4294966912  ;;  %vm100_vm0 = vcmask 1043456   ;;  %vm93_vm1 = vcmask 97280   ;;  %vm1967_vm2 = vmmov 1   ;;  %v84_v1 = vld [vmem:[#allocation3] sm:$0xff] }
  0x4a   :  { %vm2070_vm3 = vmpackc.low %vm100_vm0, %vm1967_vm2  ;;  %v85_v2 = vld [vmem:[#allocation3 + $0x8] sm:$0xf]  ;;  %v82_v3 = vld [vmem:[%s2478_s0] sm:$0xff]  ;;  %v1968_v21 = vmov 0.0|0.0   ;;  %v2487_v59 = vmov 0.0   ;;  %vm1970_vm4 = vmmov 0  }
  0x4b   :  { %v1599_v4 = vpack.c.bf16 %v85_v2, %v84_v1  ;;  %1466 = vmatprep.mubr.msk.f32.mxu0 %vm93_vm1, %v82_v3  ;;  %v223_v5 = vld [vmem:[#allocation7 + $0x8] sm:$0xff]  ;;  %v226_v6 = vld [vmem:[#allocation7 + $0x20] sm:$0xff]  ;;  %v225_v10 = vld [vmem:[#allocation7 + $0x18] sm:$0xff]  ;;  %325 = vmatprep.mubr.f32.mxu1 %v2487_v59  ;;  %vm181_vm5 = vcmask 785408   ;;  %vm598_vm6 = vcmask 261120  }
  0x4c   :  { %v83_v7 = vld [vmem:[%s2478_s0 + $0x8] sm:$0xff]  ;;  %v2081_v8 = vpack.c.bf16 %v226_v6, %v223_v5  ;;  %v222_v9 = vld [vmem:[#allocation7] sm:$0xff]  ;;  %v224_v11 = vld [vmem:[#allocation7 + $0x10] sm:$0xff] }
  0x4d   :  { %1601 = vmatprep.subr.msk.bf16.mxu0 %vm2070_vm3, %v1599_v4  ;;  %v2085_v12 = vpack.c.bf16 %v225_v10, %v222_v9  ;;  %v227_v13 = vld [vmem:[#allocation7 + $0x28] sm:$0xff]  ;;  %v229_v14 = vld [vmem:[#allocation7 + $0x38] sm:$0xff]  ;;  %v232_v15 = vld [vmem:[#allocation7 + $0x50] sm:$0xff] }
  0x4e   :  { %1604 = vmatpush3.bf16.msk.msra.mxu0 %vm2070_vm3, %v1599_v4  ;;  %1606 = vmatprep.subr.bf16.mxu1 %v2081_v8  ;;  %v2090_v16 = vpack.c.bf16 %v227_v13, %v224_v11  ;;  %v2092_v17 = vpack.c.bf16 %v232_v15, %v229_v14  ;;  %v228_v18 = vld [vmem:[#allocation7 + $0x30] sm:$0xff]  ;;  %v231_v19 = vld [vmem:[#allocation7 + $0x48] sm:$0xff]  ;;  %v230_v20 = vld [vmem:[#allocation7 + $0x40] sm:$0xff] }
  0x4f   :  { %1629 = vmatprep.subr.bf16.mxu0 %v1968_v21  ;;  %1608 = vmatpush1.bf16.msra.mxu1 %v2085_v12  ;;  %v2096_v22 = vpack.c.bf16 %v231_v19, %v228_v18  ;;  %v233_v23 = vld [vmem:[#allocation7 + $0x58] sm:$0xff]  ;;  %v235_v24 = vld [vmem:[#allocation7 + $0x68] sm:$0xff]  ;;  %v238_v25 = vld [vmem:[#allocation7 + $0x80] sm:$0xff] }
  0x50   :  { %1610 = vmatprep.subr.bf16.mxu1 %v2092_v17  ;;  %v2099_v26 = vpack.c.bf16 %v238_v25, %v235_v24  ;;  %v234_v27 = vld [vmem:[#allocation7 + $0x60] sm:$0xff]  ;;  %v237_v28 = vld [vmem:[#allocation7 + $0x78] sm:$0xff]  ;;  %v2103_v29 = vpack.c.bf16 %v233_v23, %v230_v20  ;;  %v236_v31 = vld [vmem:[#allocation7 + $0x70] sm:$0xff] }
  0x51   :  { %1467 = vmatmul.mubr.msk.f32.vlgmr.msra.gmra.mrb[0].mxu0 %vm93_vm1, %v83_v7  ;;  %v2107_v30 = vpack.c.bf16 %v237_v28, %v234_v27  ;;  %v239_v32 = vld [vmem:[#allocation7 + $0x88] sm:$0xff]  ;;  %v241_v34 = vld [vmem:[#allocation7 + $0x98] sm:$0xff]  ;;  %v244_v35 = vld [vmem:[#allocation7 + $0xb0] sm:$0xff] }
  0x52   :  { %1631 = vmatpush3.bf16.msra.mxu0 %v2090_v16  ;;  %v2111_v33 = vpack.c.bf16 %v239_v32, %v236_v31  ;;  %v2117_v36 = vpack.c.bf16 %v244_v35, %v241_v34  ;;  %v240_v37 = vld [vmem:[#allocation7 + $0x90] sm:$0xff]  ;;  %v243_v38 = vld [vmem:[#allocation7 + $0xa8] sm:$0xff]  ;;  %v242_v39 = vld [vmem:[#allocation7 + $0xa0] sm:$0xff]  ;;  %1493 = vmatprep.mubr.msk.f32.mxu0 %vm1970_vm4, %v2487_v59 }
  0x53   :  { %1632 = vmatprep.subr.bf16.mxu0 %v1968_v21  ;;  %1612 = vmatpush1.bf16.msra.mxu1 %v2096_v22  ;;  %v2119_v40 = vpack.c.bf16 %v243_v38, %v240_v37  ;;  %v245_v41 = vld [vmem:[#allocation7 + $0xb8] sm:$0xff]  ;;  %v247_v43 = vld [vmem:[#allocation7 + $0xc8] sm:$0xff]  ;;  %v250_v44 = vld [vmem:[#allocation7 + $0xe0] sm:$0xff] }
  0x54   :  { %1614 = vmatprep.subr.bf16.mxu1 %v2099_v26  ;;  %v2122_v42 = vpack.c.bf16 %v245_v41, %v242_v39  ;;  %v2126_v45 = vpack.c.bf16 %v250_v44, %v247_v43  ;;  %v246_v46 = vld [vmem:[#allocation7 + $0xc0] sm:$0xff]  ;;  %v249_v47 = vld [vmem:[#allocation7 + $0xd8] sm:$0xff]  ;;  %v248_v48 = vld [vmem:[#allocation7 + $0xd0] sm:$0xff] }
  0x55   :  { %v2129_v49 = vpack.c.bf16 %v249_v47, %v246_v46  ;;  %v251_v50 = vld [vmem:[#allocation7 + $0xe8] sm:$0xff]  ;;  %v253_v52 = vld [vmem:[#allocation7 + $0xf8] sm:$0xff]  ;;  %v256_v53 = vld [vmem:[#allocation7 + $0x110] sm:$0xff] }
  0x56   :  { %1634 = vmatpush3.bf16.msra.mxu0 %v2103_v29  ;;  %v2132_v51 = vpack.c.bf16 %v251_v50, %v248_v48  ;;  %v252_v54 = vld [vmem:[#allocation7 + $0xf0] sm:$0xff]  ;;  %v2136_v55 = vpack.c.bf16 %v256_v53, %v253_v52  ;;  %v255_v56 = vld [vmem:[#allocation7 + $0x108] sm:$0xff]  ;;  %v254_v57 = vld [vmem:[#allocation7 + $0x100] sm:$0xff] }
  0x57   :  { %1635 = vmatprep.subr.bf16.mxu0 %v1968_v21  ;;  %1616 = vmatpush1.bf16.msra.mxu1 %v2107_v30  ;;  %v257_v58 = vld [vmem:[#allocation7 + $0x118] sm:$0xff]  ;;  %v2140_v60 = vpack.c.bf16 %v255_v56, %v252_v54  ;;  %v187_v62 = vld [vmem:[#allocation5 + $0x8] sm:$0xff]  ;;  %v190_v63 = vld [vmem:[#allocation5 + $0x20] sm:$0xff] }
  0x58   :  { %1618 = vmatprep.subr.bf16.mxu1 %v2117_v36  ;;  %v2142_v61 = vpack.c.bf16 %v257_v58, %v254_v57  ;;  %v2147_v0 = vpack.c.bf16 %v190_v63, %v187_v62  ;;  %v1309_v1 = vld [vmem:[%s2480_s2] ss:$0 sm:$0xff]  ;;  %v189_v10 = vld [vmem:[#allocation5 + $0x18] sm:$0xff]  ;;  %v188_v11 = vld [vmem:[#allocation5 + $0x10] sm:$0xff] }
  0x59   :  { %v186_v9 = vld [vmem:[#allocation5] sm:$0xff]  ;;  %v191_v13 = vld [vmem:[#allocation5 + $0x28] sm:$0xff]  ;;  %v193_v14 = vld [vmem:[#allocation5 + $0x38] sm:$0xff] }
  0x5a   :  { %1637 = vmatpush3.bf16.msra.mxu0 %v2111_v33  ;;  %v196_v15 = vld [vmem:[#allocation5 + $0x50] sm:$0xff]  ;;  %v2158_v18 = vpack.c.bf16 %v189_v10, %v186_v9  ;;  %v2160_v19 = vpack.c.bf16 %v191_v13, %v188_v11  ;;  %v195_v24 = vld [vmem:[#allocation5 + $0x48] sm:$0xff]  ;;  %v194_v25 = vld [vmem:[#allocation5 + $0x40] sm:$0xff] }
  0x5b   :  { %1638 = vmatprep.subr.bf16.mxu0 %v1968_v21  ;;  %1620 = vmatpush1.bf16.msra.mxu1 %v2119_v40  ;;  %v192_v20 = vld [vmem:[#allocation5 + $0x30] sm:$0xff]  ;;  %v2162_v23 = vpack.c.bf16 %v196_v15, %v193_v14  ;;  %v197_v27 = vld [vmem:[#allocation5 + $0x58] sm:$0xff]  ;;  %v199_v31 = vld [vmem:[#allocation5 + $0x68] sm:$0xff] }
  0x5c   :  { %1622 = vmatprep.subr.bf16.mxu1 %v2126_v45  ;;  %v202_v32 = vld [vmem:[#allocation5 + $0x80] sm:$0xff]  ;;  %v2168_v34 = vpack.c.bf16 %v195_v24, %v192_v20  ;;  %v2170_v35 = vpack.c.bf16 %v197_v27, %v194_v25  ;;  %v201_v39 = vld [vmem:[#allocation5 + $0x78] sm:$0xff]  ;;  %v200_v41 = vld [vmem:[#allocation5 + $0x70] sm:$0xff] }
  0x5d   :  { %v198_v37 = vld [vmem:[#allocation5 + $0x60] sm:$0xff]  ;;  %v2174_v38 = vpack.c.bf16 %v202_v32, %v199_v31  ;;  %v203_v43 = vld [vmem:[#allocation5 + $0x88] sm:$0xff]  ;;  %v205_v44 = vld [vmem:[#allocation5 + $0x98] sm:$0xff] }
  0x5e   :  { %1640 = vmatpush3.bf16.msra.mxu0 %v2122_v42  ;;  %v208_v46 = vld [vmem:[#allocation5 + $0xb0] sm:$0xff]  ;;  %v2181_v47 = vpack.c.bf16 %v201_v39, %v198_v37  ;;  %v2183_v48 = vpack.c.bf16 %v203_v43, %v200_v41  ;;  %v207_v53 = vld [vmem:[#allocation5 + $0xa8] sm:$0xff]  ;;  %v206_v54 = vld [vmem:[#allocation5 + $0xa0] sm:$0xff] }
  0x5f   :  { %1641 = vmatprep.subr.bf16.mxu0 %v1968_v21  ;;  %1624 = vmatpush1.bf16.msra.mxu1 %v2129_v49  ;;  %v204_v50 = vld [vmem:[#allocation5 + $0x90] sm:$0xff]  ;;  %v2187_v52 = vpack.c.bf16 %v208_v46, %v205_v44  ;;  %v209_v56 = vld [vmem:[#allocation5 + $0xb8] sm:$0xff]  ;;  %v211_v57 = vld [vmem:[#allocation5 + $0xc8] sm:$0xff] }
  0x60   :  { %1626 = vmatprep.subr.bf16.mxu1 %v2136_v55  ;;  %v214_v58 = vld [vmem:[#allocation5 + $0xe0] sm:$0xff]  ;;  %v2191_v62 = vpack.c.bf16 %v207_v53, %v204_v50  ;;  %v2193_v63 = vpack.c.bf16 %v209_v56, %v206_v54  ;;  %v216_v11 = vld [vmem:[#allocation5 + $0xf0] sm:$0xff]  ;;  %v219_v14 = vld [vmem:[#allocation5 + $0x108] sm:$0xff] }
  0x61   :  { %v218_v15 = vld [vmem:[#allocation5 + $0x100] sm:$0xff]  ;;  %v221_v20 = vld [vmem:[#allocation5 + $0x118] sm:$0xff]  ;;  %v572_v25 = vld [vmem:[%s2484_s6 + $0x88] sm:$0xff]  ;;  %v2217_v27 = vpack.c.bf16 %v219_v14, %v216_v11 }
  0x62   :  { %1643 = vmatpush3.bf16.msra.mxu0 %v2132_v51  ;;  %v571_v24 = vld [vmem:[%s2484_s6 + $0x80] sm:$0xff]  ;;  %v556_v37 = vld [vmem:[%s2484_s6 + $0x8] sm:$0xff]  ;;  %v573_v43 = vld [vmem:[%s2484_s6 + $0x90] sm:$0xff] }
  0x63   :  { %1644 = vmatprep.subr.bf16.mxu0 %v1968_v21  ;;  %1628 = vmatpush1.bf16.msra.mxu1 %v2140_v60  ;;  %v2223_v31 = vpack.c.bf16 %v572_v25, %v571_v24  ;;  %v555_v32 = vld [vmem:[%s2484_s6] sm:$0xff]  ;;  %v574_v44 = vld [vmem:[%s2484_s6 + $0x98] sm:$0xff]  ;;  %v557_v50 = vld [vmem:[%s2484_s6 + $0x10] sm:$0xff] }
  0x64   :  { %1648 = vmatprep.subr.bf16.mxu1 %v2147_v0  ;;  %v2233_v39 = vpack.c.bf16 %v556_v37, %v555_v32  ;;  %v2248_v46 = vpack.c.bf16 %v574_v44, %v573_v43  ;;  %v558_v53 = vld [vmem:[%s2484_s6 + $0x18] sm:$0xff]  ;;  %v575_v56 = vld [vmem:[%s2484_s6 + $0xa0] sm:$0xff]  ;;  %v561_v11 = vld [vmem:[%s2484_s6 + $0x30] sm:$0xff] }
  0x65   :  { %v2256_v54 = vpack.c.bf16 %v558_v53, %v557_v50  ;;  %v562_v14 = vld [vmem:[%s2484_s6 + $0x38] sm:$0xff]  ;;  %v587_v25 = vld [vmem:[%s2484_s6 + $0x100] sm:$0xff]  ;;  %v588_v43 = vld [vmem:[%s2484_s6 + $0x108] sm:$0xff] }
  0x66   :  { %1646 = vmatpush3.bf16.msra.mxu0 %v2142_v61  ;;  %v2298_v24 = vpack.c.bf16 %v562_v14, %v561_v11  ;;  %v563_v37 = vld [vmem:[%s2484_s6 + $0x40] sm:$0xff]  ;;  %v581_v44 = vld [vmem:[%s2484_s6 + $0xd0] sm:$0xff]  ;;  %v582_v50 = vld [vmem:[%s2484_s6 + $0xd8] sm:$0xff]  ;;  %v2321_v53 = vpack.c.bf16 %v588_v43, %v587_v25 }
  0x67   :  { %1671 = vmatprep.subr.bf16.mxu0 %v1968_v21 }
 0x124   :  { %v1468_v2 = vpop.f32.mrb[0].mxu0 }
 0x125   :  { %v176_v3 = vadd.f32 %v1468_v2, %v1309_v1  ;;  %v170_v4 = vpop.f32.mrb[1].mxu0  ;;  %v2197_v2 = vpack.c.bf16 %v214_v58, %v211_v57  ;;  %v576_v57 = vld [vmem:[%s2484_s6 + $0xa8] sm:$0xff]  ;;  %v559_v58 = vld [vmem:[%s2484_s6 + $0x20] sm:$0xff] }
 0x126   :  { %v171_v5 = vadd.f32 %v1309_v1, %v170_v4  ;;  %v210_v1 = vld [vmem:[#allocation5 + $0xc0] sm:$0xff]  ;;  %v212_v4 = vld [vmem:[#allocation5 + $0xd0] sm:$0xff] }
 0x127   :  { %v180_v6 = vmax.f32 %v176_v3, 0.0  ;;  %v213_v3 = vld [vmem:[#allocation5 + $0xd8] sm:$0xff] }
 0x128   :  { %v179_v7 = vmax.f32 %v171_v5, 0.0  ;;  %v215_v5 = vld [vmem:[#allocation5 + $0xe8] sm:$0xff]  ;;  %v2201_v9 = vpack.c.bf16 %v213_v3, %v210_v1  ;;  %v2268_v1 = vpack.c.bf16 %v576_v57, %v575_v56  ;;  %v2328_v57 = vpack.c.bf16 %v582_v50, %v581_v44  ;;  %v569_v44 = vld [vmem:[%s2484_s6 + $0x70] sm:$0xff]  ;;  %v570_v50 = vld [vmem:[%s2484_s6 + $0x78] sm:$0xff] }
 0x129   :  { %183 = vst.msk [vmem:[#allocation2 + $0x8] sm:$0xff] %vm181_vm5, %v180_v6  ;;  %v217_v6 = vld [vmem:[#allocation5 + $0xf8] sm:$0xff]  ;;  %v2203_v10 = vpack.c.bf16 %v215_v5, %v212_v4  ;;  %v560_v3 = vld [vmem:[%s2484_s6 + $0x28] sm:$0xff]  ;;  %v577_v4 = vld [vmem:[%s2484_s6 + $0xb0] sm:$0xff] }
 0x12a   :  { %182 = vst.msk [vmem:[#allocation2] sm:$0xff] %vm181_vm5, %v179_v7  ;;  %v220_v7 = vld [vmem:[#allocation5 + $0x110] sm:$0xff]  ;;  %v578_v5 = vld [vmem:[%s2484_s6 + $0xb8] sm:$0xff]  ;;  %2499 = vst [vmem:[#allocation14_spill] sm:$0xff] %v2328_v57 }
 0x12b   :  { %v2207_v13 = vpack.c.bf16 %v220_v7, %v217_v6  ;;  %v2280_v6 = vpack.c.bf16 %v560_v3, %v559_v58  ;;  %v2283_v7 = vpack.c.bf16 %v578_v5, %v577_v4  ;;  %v565_v58 = vld [vmem:[%s2484_s6 + $0x50] sm:$0xff]  ;;  %v566_v3 = vld [vmem:[%s2484_s6 + $0x58] sm:$0xff]  ;;  %v583_v4 = vld [vmem:[%s2484_s6 + $0xe0] sm:$0xff] }
 0x12c   :  { %v584_v5 = vld [vmem:[%s2484_s6 + $0xe8] sm:$0xff]  ;;  %v2344_v11 = vpack.c.bf16 %v566_v3, %v565_v58  ;;  %v2374_v58 = vpack.c.bf16 %v570_v50, %v569_v44  ;;  %v589_v3 = vld [vmem:[%s2484_s6 + $0x110] sm:$0xff] }
 0x12d   :  { %v2347_v14 = vpack.c.bf16 %v584_v5, %v583_v4  ;;  %v590_v4 = vld [vmem:[%s2484_s6 + $0x118] sm:$0xff] }
 0x12e   :  { %2500 = vst [vmem:[#allocation15_spill] sm:$0xff] %v2344_v11  ;;  %2504 = vst [vmem:[#allocation19_spill] sm:$0xff] %v2374_v58  ;;  %v2383_v5 = vpack.c.bf16 %v590_v4, %v589_v3 }
 0x12f   :  { %2501 = vst [vmem:[#allocation16_spill] sm:$0xff] %v2347_v14 }
 0x131   :  { %v185_v28 = vld [vmem:[#allocation2] sm:$0x7f] }
 0x132   :  { %1313 = vmatmul.mubr.msk.f32.vlgmr.msra.gmra.mrb[0].mxu1 %vm181_vm5, %v185_v28  ;;  %1494 = vmatmul.mubr.msk.f32.vlgmr.msra.gmra.mrb[2].mxu0 %vm181_vm5, %v185_v28  ;;  %v2219_v28 = vpack.c.bf16 %v221_v20, %v218_v15  ;;  %v184_v41 = vld [vmem:[#allocation2 + $0x1] sm:$0x7f]  ;;  %v580_v20 = vld [vmem:[%s2484_s6 + $0xc8] sm:$0xff] }
 0x133   :  { %1650 = vmatpush1.bf16.msra.mxu1 %v2158_v18  ;;  %1673 = vmatpush3.bf16.msra.mxu0 %v2160_v19  ;;  %v579_v15 = vld [vmem:[%s2484_s6 + $0xc0] sm:$0xff] }
 0x134   :  { %1652 = vmatprep.subr.bf16.mxu1 %v2162_v23  ;;  %1674 = vmatprep.subr.bf16.mxu0 %v1968_v21  ;;  %v2304_v32 = vpack.c.bf16 %v580_v20, %v579_v15  ;;  %v567_v15 = vld [vmem:[%s2484_s6 + $0x60] sm:$0xff]  ;;  %v568_v20 = vld [vmem:[%s2484_s6 + $0x68] sm:$0xff] }
 0x135   :  { %469 = vmatprep.mubr.f32.mxu1 %v2487_v59  ;;  %1520 = vmatprep.mubr.msk.f32.mxu0 %vm1970_vm4, %v2487_v59  ;;  %v2356_v25 = vpack.c.bf16 %v568_v20, %v567_v15 }
 0x137   :  { %1654 = vmatpush1.bf16.msra.mxu1 %v2168_v34  ;;  %1676 = vmatpush3.bf16.msra.mxu0 %v2170_v35  ;;  %2502 = vst [vmem:[#allocation17_spill] sm:$0xff] %v2356_v25 }
 0x138   :  { %1656 = vmatprep.subr.bf16.mxu1 %v2174_v38  ;;  %1677 = vmatprep.subr.bf16.mxu0 %v1968_v21 }
 0x13b   :  { %1658 = vmatpush1.bf16.msra.mxu1 %v2181_v47  ;;  %1679 = vmatpush3.bf16.msra.mxu0 %v2183_v48 }
 0x13c   :  { %1660 = vmatprep.subr.bf16.mxu1 %v2187_v52  ;;  %1680 = vmatprep.subr.bf16.mxu0 %v1968_v21 }
 0x13f   :  { %1662 = vmatpush1.bf16.msra.mxu1 %v2191_v62  ;;  %1682 = vmatpush3.bf16.msra.mxu0 %v2193_v63 }
 0x140   :  { %1664 = vmatprep.subr.bf16.mxu1 %v2197_v2  ;;  %1683 = vmatprep.subr.bf16.mxu0 %v1968_v21 }
 0x143   :  { %1666 = vmatpush1.bf16.msra.mxu1 %v2201_v9  ;;  %1685 = vmatpush3.bf16.msra.mxu0 %v2203_v10 }
 0x144   :  { %1668 = vmatprep.subr.bf16.mxu1 %v2207_v13  ;;  %1686 = vmatprep.subr.bf16.mxu0 %v1968_v21 }
 0x147   :  { %1670 = vmatpush1.bf16.msra.mxu1 %v2217_v27  ;;  %1688 = vmatpush3.bf16.msra.mxu0 %v2219_v28 }
 0x148   :  { %1690 = vmatprep.subr.bf16.mxu1 %v2223_v31  ;;  %1721 = vmatprep.subr.bf16.mxu0 %v1968_v21 }
 0x14a   :  { %1315 = vmatmul.mubr.msk.f32.vlgmr.msra.gmra.mrb[0].mxu1 %vm181_vm5, %v184_v41  ;;  %1521 = vmatmul.mubr.msk.f32.vlgmr.msra.gmra.mrb[4].mxu0 %vm181_vm5, %v184_v41  ;;  %v564_v41 = vld [vmem:[%s2484_s6 + $0x48] sm:$0xff] }
 0x14b   :  { %1692 = vmatpush3.bf16.msra.mxu1 %v2233_v39  ;;  %1531 = vmatprep.mubr.msk.f32.mxu0 %vm1970_vm4, %v2487_v59  ;;  %v2324_v56 = vpack.c.bf16 %v564_v41, %v563_v37  ;;  %v585_v37 = vld [vmem:[%s2484_s6 + $0xf0] sm:$0xff]  ;;  %v586_v41 = vld [vmem:[%s2484_s6 + $0xf8] sm:$0xff] }
 0x14c   :  { %1694 = vmatprep.subr.bf16.mxu1 %v2248_v46  ;;  %1723 = vmatpush3.bf16.msra.mxu0 %v2321_v53  ;;  %v2366_v43 = vpack.c.bf16 %v586_v41, %v585_v37  ;;  %v546_v37 = vld [vmem:[#allocation8] sm:$0x7f]  ;;  %v547_v41 = vld [vmem:[#allocation8 + $0x8] sm:$0x7f]  ;;  %v548_v59 = vld [vmem:[#allocation8 + $0x10] sm:$0x7f] }
 0x14d   :  { %2498 = vst [vmem:[#allocation13_spill] sm:$0xff] %v2324_v56  ;;  %1724 = vmatprep.subr.bf16.mxu0 %v1968_v21 }
 0x14e   :  { %2503 = vst [vmem:[#allocation18_spill] sm:$0xff] %v2366_v43 }
 0x14f   :  { %1696 = vmatpush3.bf16.msra.mxu1 %v2256_v54 }
 0x150   :  { %1698 = vmatprep.subr.bf16.mxu1 %v2268_v1  ;;  %1726 = vmatpush3.bf16.msra.mxu0 %v2383_v5 }
 0x151   :  { %1728 = vmatprep.subr.bf16.mxu0 %v2081_v8  ;;  %v2505_v8 = vmov 0.0  }
 0x153   :  { %1700 = vmatpush3.bf16.msra.mxu1 %v2280_v6 }
 0x154   :  { %1702 = vmatprep.subr.bf16.mxu1 %v2283_v7 }
 0x157   :  { %1704 = vmatpush3.bf16.msra.mxu1 %v2298_v24 }
 0x158   :  { %1706 = vmatprep.subr.bf16.mxu1 %v2304_v32 }
 0x15b   :  { %1708 = vmatpush3.bf16.msra.mxu1 %v2324_v56 }
 0x15c   :  { %1710 = vmatprep.subr.bf16.mxu1 %v2328_v57 }
 0x15f   :  { %1712 = vmatpush3.bf16.msra.mxu1 %v2344_v11 }
 0x160   :  { %1714 = vmatprep.subr.bf16.mxu1 %v2347_v14 }
 0x163   :  { %1716 = vmatpush3.bf16.msra.mxu1 %v2356_v25 }
 0x164   :  { %1718 = vmatprep.subr.bf16.mxu1 %v2366_v43 }
 0x167   :  { %1720 = vmatpush3.bf16.msra.mxu1 %v2374_v58 }
 0x168   :  { %1751 = vmatprep.subr.bf16.mxu1 %v1968_v21 }
 0x205   :  { %v398_v15 = vpop.f32.mrb[2].mxu0 }
 0x206   :  { %v1495_v20 = vpop.f32.mrb[3].mxu0 }
 0x21d   :  { %v471_v44 = vpop.f32.mrb[0].mxu1  ;;  %v542_v50 = vpop.f32.mrb[4].mxu0 }
 0x21e   :  { %v549_v25 = vadd.f32 %v546_v37, %v471_v44  ;;  %v543_v14 = vadd.f32 %v542_v50, %v398_v15  ;;  %v473_v43 = vpop.f32.mrb[1].mxu1  ;;  %v1522_v3 = vpop.f32.mrb[5].mxu0 }
 0x21f   :  { %v550_v4 = vadd.f32 %v547_v41, %v473_v43 }
 0x220   :  { %v551_v11 = vadd.f32 %v548_v59, %v543_v14  ;;  %v552_v57 = vmax.f32 %v549_v25, 0.0 }
 0x221   :  { %v553_v58 = vmax.f32 %v550_v4, 0.0 }
 0x222   :  { %v554_v56 = vmax.f32 %v551_v11, 0.0 }
 0x223   :  { %666 = vmatprep.mubr.f32.mxu1 %v553_v58 }
 0x224   :  { %667 = vmatmul.mubr.f32.vlgmr.msra.gmra.mrb[2].mxu1 %v552_v57  ;;  %1532 = vmatmul.mubr.msk.f32.vlgmr.msra.gmra.mrb[6].mxu0 %vm598_vm6, %v554_v56 }
 0x225   :  { %1730 = vmatpush1.bf16.msra.mxu0 %v2085_v12  ;;  %1753 = vmatpush3.bf16.msra.mxu1 %v2090_v16  ;;  %v744_v12 = vld [vmem:[#allocation2 + $0x8] sm:$0x7f] }
 0x226   :  { %1732 = vmatprep.subr.bf16.mxu0 %v2092_v17  ;;  %1754 = vmatprep.subr.bf16.mxu1 %v1968_v21  ;;  %v743_v16 = vld [vmem:[#allocation2 + $0x9] sm:$0x7f]  ;;  %v2506_v17 = vld [vmem:[#allocation13_spill] sm:$0xff] }
 0x227   :  { %884 = vmatprep.mubr.f32.mxu0 %v2505_v8  ;;  %1558 = vmatprep.mubr.msk.f32.mxu1 %vm1970_vm4, %v2505_v8 }
 0x229   :  { %1734 = vmatpush1.bf16.msra.mxu0 %v2096_v22  ;;  %1756 = vmatpush3.bf16.msra.mxu1 %v2103_v29  ;;  %v2508_v22 = vld [vmem:[#allocation15_spill] sm:$0xff]  ;;  %v2510_v29 = vld [vmem:[#allocation17_spill] sm:$0xff] }
 0x22a   :  { %1736 = vmatprep.subr.bf16.mxu0 %v2099_v26  ;;  %1757 = vmatprep.subr.bf16.mxu1 %v1968_v21  ;;  %v2509_v26 = vld [vmem:[#allocation16_spill] sm:$0xff] }
 0x22d   :  { %1738 = vmatpush1.bf16.msra.mxu0 %v2107_v30  ;;  %1759 = vmatpush3.bf16.msra.mxu1 %v2111_v33  ;;  %v2511_v30 = vld [vmem:[#allocation18_spill] sm:$0xff]  ;;  %v2512_v33 = vld [vmem:[#allocation19_spill] sm:$0xff] }
 0x22e   :  { %1740 = vmatprep.subr.bf16.mxu0 %v2117_v36  ;;  %1760 = vmatprep.subr.bf16.mxu1 %v1968_v21 }
 0x231   :  { %1742 = vmatpush1.bf16.msra.mxu0 %v2119_v40  ;;  %1762 = vmatpush3.bf16.msra.mxu1 %v2122_v42  ;;  %v1317_v42 = vld [vmem:[%s2485_s7] ss:$0 sm:$0xff] }
 0x232   :  { %1744 = vmatprep.subr.bf16.mxu0 %v2126_v45  ;;  %1763 = vmatprep.subr.bf16.mxu1 %v1968_v21 }
 0x235   :  { %1746 = vmatpush1.bf16.msra.mxu0 %v2129_v49  ;;  %1765 = vmatpush3.bf16.msra.mxu1 %v2132_v51 }
 0x236   :  { %1748 = vmatprep.subr.bf16.mxu0 %v2136_v55  ;;  %1766 = vmatprep.subr.bf16.mxu1 %v1968_v21 }
 0x239   :  { %1750 = vmatpush1.bf16.msra.mxu0 %v2140_v60  ;;  %1768 = vmatpush3.bf16.msra.mxu1 %v2142_v61 }
 0x23a   :  { %1770 = vmatprep.subr.bf16.mxu0 %v2147_v0  ;;  %1793 = vmatprep.subr.bf16.mxu1 %v1968_v21  ;;  %v1105_v0 = vld [vmem:[#allocation8] sm:$0x7f] }
 0x23c   :  { %1319 = vmatmul.mubr.msk.f32.vlgmr.msra.gmra.mrb[8].mxu0 %vm181_vm5, %v744_v12  ;;  %1559 = vmatmul.mubr.msk.f32.vlgmr.msra.gmra.mrb[4].mxu1 %vm181_vm5, %v744_v12 }
 0x23d   :  { %1772 = vmatpush1.bf16.msra.mxu0 %v2158_v18  ;;  %1795 = vmatpush3.bf16.msra.mxu1 %v2160_v19  ;;  %v1106_v18 = vld [vmem:[#allocation8 + $0x8] sm:$0x7f] }
 0x23e   :  { %1774 = vmatprep.subr.bf16.mxu0 %v2162_v23  ;;  %1796 = vmatprep.subr.bf16.mxu1 %v1968_v21 }
 0x23f   :  { %1028 = vmatprep.mubr.f32.mxu0 %v2505_v8  ;;  %1585 = vmatprep.mubr.msk.f32.mxu1 %vm1970_vm4, %v2505_v8 }
 0x241   :  { %1776 = vmatpush1.bf16.msra.mxu0 %v2168_v34  ;;  %1798 = vmatpush3.bf16.msra.mxu1 %v2170_v35  ;;  %v1107_v34 = vld [vmem:[#allocation8 + $0x10] sm:$0x7f] }
 0x242   :  { %1778 = vmatprep.subr.bf16.mxu0 %v2174_v38  ;;  %1799 = vmatprep.subr.bf16.mxu1 %v1968_v21 }
 0x245   :  { %1780 = vmatpush1.bf16.msra.mxu0 %v2181_v47  ;;  %1801 = vmatpush3.bf16.msra.mxu1 %v2183_v48 }
 0x246   :  { %1782 = vmatprep.subr.bf16.mxu0 %v2187_v52  ;;  %1802 = vmatprep.subr.bf16.mxu1 %v1968_v21 }
 0x249   :  { %1784 = vmatpush1.bf16.msra.mxu0 %v2191_v62  ;;  %1804 = vmatpush3.bf16.msra.mxu1 %v2193_v63 }
 0x24a   :  { %1786 = vmatprep.subr.bf16.mxu0 %v2197_v2  ;;  %1805 = vmatprep.subr.bf16.mxu1 %v1968_v21 }
 0x24d   :  { %1788 = vmatpush1.bf16.msra.mxu0 %v2201_v9  ;;  %1807 = vmatpush3.bf16.msra.mxu1 %v2203_v10 }
 0x24e   :  { %1790 = vmatprep.subr.bf16.mxu0 %v2207_v13  ;;  %1808 = vmatprep.subr.bf16.mxu1 %v1968_v21 }
 0x251   :  { %1792 = vmatpush1.bf16.msra.mxu0 %v2217_v27  ;;  %1810 = vmatpush3.bf16.msra.mxu1 %v2219_v28 }
 0x252   :  { %1812 = vmatprep.subr.bf16.mxu0 %v2223_v31  ;;  %1843 = vmatprep.subr.bf16.mxu1 %v1968_v21 }
 0x254   :  { %1321 = vmatmul.mubr.msk.f32.vlgmr.msra.gmra.mrb[8].mxu0 %vm181_vm5, %v743_v16  ;;  %1586 = vmatmul.mubr.msk.f32.vlgmr.msra.gmra.mrb[6].mxu1 %vm181_vm5, %v743_v16 }
 0x255   :  { %1814 = vmatpush3.bf16.msra.mxu0 %v2233_v39  ;;  %1845 = vmatpush3.bf16.msra.mxu1 %v2321_v53 }
 0x256   :  { %1816 = vmatprep.subr.bf16.mxu0 %v2248_v46  ;;  %1846 = vmatprep.subr.bf16.mxu1 %v1968_v21  ;;  %v2507_v21 = vld [vmem:[#allocation14_spill] sm:$0xff] }
 0x257   :  { %1596 = vmatprep.mubr.msk.f32.mxu1 %vm1970_vm4, %v2505_v8 }
 0x259   :  { %1818 = vmatpush3.bf16.msra.mxu0 %v2256_v54  ;;  %1848 = vmatpush3.bf16.msra.mxu1 %v2383_v5 }
 0x25a   :  { %1820 = vmatprep.subr.bf16.mxu0 %v2268_v1 }
 0x25d   :  { %1822 = vmatpush3.bf16.msra.mxu0 %v2280_v6 }
 0x25e   :  { %1824 = vmatprep.subr.bf16.mxu0 %v2283_v7 }
 0x261   :  { %1826 = vmatpush3.bf16.msra.mxu0 %v2298_v24 }
 0x262   :  { %1828 = vmatprep.subr.bf16.mxu0 %v2304_v32 }
 0x265   :  { %1830 = vmatpush3.bf16.msra.mxu0 %v2506_v17 }
 0x266   :  { %1832 = vmatprep.subr.bf16.mxu0 %v2507_v21 }
 0x269   :  { %1834 = vmatpush3.bf16.msra.mxu0 %v2508_v22 }
 0x26a   :  { %1836 = vmatprep.subr.bf16.mxu0 %v2509_v26 }
 0x26d   :  { %1838 = vmatpush3.bf16.msra.mxu0 %v2510_v29 }
 0x26e   :  { %1840 = vmatprep.subr.bf16.mxu0 %v2511_v30 }
 0x271   :  { %1842 = vmatpush3.bf16.msra.mxu0 %v2512_v33 }
 0x2f7   :  { %v1388_v36 = vpop.f32.mrb[2].mxu1  ;;  %v738_v40 = vpop.f32.mrb[6].mxu0 }
 0x2f8   :  { %v1389_v45 = vpop.f32.mrb[3].mxu1  ;;  %v1533_v49 = vpop.f32.mrb[7].mxu0 }
 0x2f9   :  { %v1390_v51 = vadd.f32 %v1389_v45, %v1388_v36 }
 0x2fb   :  { %v669_v55 = vadd.f32 %v1390_v51, %v1317_v42 }
 0x2fd   :  { %v739_v59 = vadd.f32 %v738_v40, %v669_v55 }
 0x2ff   :  { %742 = vst [vmem:[%s2486_s8] sm:$0x7f] %v739_v59 }
 0x30f   :  { %v957_v60 = vpop.f32.mrb[4].mxu1 }
 0x310   :  { %v1560_v61 = vpop.f32.mrb[5].mxu1 }
 0x327   :  { %v1030_v19 = vpop.f32.mrb[8].mxu0  ;;  %v1101_v23 = vpop.f32.mrb[6].mxu1 }
 0x328   :  { %v1108_v35 = vadd.f32 %v1105_v0, %v1030_v19  ;;  %v1102_v38 = vadd.f32 %v1101_v23, %v957_v60  ;;  %v1032_v47 = vpop.f32.mrb[9].mxu0  ;;  %v1587_v48 = vpop.f32.mrb[7].mxu1 }
 0x329   :  { %v1109_v52 = vadd.f32 %v1106_v18, %v1032_v47 }
 0x32a   :  { %v1110_v62 = vadd.f32 %v1107_v34, %v1102_v38  ;;  %v1111_v2 = vmax.f32 %v1108_v35, 0.0 }
 0x32b   :  { %v1112_v63 = vmax.f32 %v1109_v52, 0.0 }
 0x32c   :  { %v1113_v9 = vmax.f32 %v1110_v62, 0.0 }
 0x32d   :  { %1224 = vmatprep.mubr.f32.mxu0 %v1112_v63 }
 0x32e   :  { %1225 = vmatmul.mubr.f32.vlgmr.msra.gmra.mrb[10].mxu0 %v1111_v2  ;;  %1597 = vmatmul.mubr.msk.f32.vlgmr.msra.gmra.mrb[8].mxu1 %vm598_vm6, %v1113_v9 }
 0x401   :  { %v1454_v10 = vpop.f32.mrb[10].mxu0  ;;  %v1296_v13 = vpop.f32.mrb[8].mxu1 }
 0x402   :  { %v1455_v27 = vpop.f32.mrb[11].mxu0  ;;  %v1598_v28 = vpop.f32.mrb[9].mxu1 }
 0x403   :  { %v1456_v31 = vadd.f32 %v1455_v27, %v1454_v10 }
 0x405   :  { %v1227_v39 = vadd.f32 %v1456_v31, %v1317_v42 }
 0x407   :  { %v1297_v46 = vadd.f32 %v1296_v13, %v1227_v39 }
 0x409   :  { %1325 = vst [vmem:[%s2486_s8 + $0x8] sm:$0x7f] %v1297_v46 }
 0x40a   :  { %1306 = vsyncpa [#allocation4], 1 }
 0x40b   :  { %1307 = vsyncpa [#allocation6], 1 }
 0x40c   :  { %1308 = vsyncpa [#allocation9], 1 }

</bundles_post_ra>
